<compile_context>
chip_gen: v7x
topology: tpu7x:2x2x1
jax: 0.10.0
libtpu: 0.0.40
codegen_flags: <defaults>
</compile_context>

<pallas_src>
from typing import NamedTuple

import jax
import jax.numpy as jnp
from jax.experimental import pallas as pl
from jax.experimental.pallas import tpu as pltpu


class ConvMeta(NamedTuple):
    cin: int
    cout: int
    kh: int
    kw: int
    h: int
    w: int
    ph0: int
    ph1: int
    pw0: int
    pw1: int


def _conv_bn_relu_kernel(x_ref, w_ref, shift_ref, o_ref):
    # x_ref:     (M, K)  H-axis im2col LHS, bf16.   M = N*H, K = kh*Wp*Cin
    # w_ref:     (K, C)  Toeplitz + BN-scale-folded weights, bf16.  C = W*Cout
    # shift_ref: (1, C)  BN shift, tiled over W, f32
    # o_ref:     (M, C)  lane-dense output slab, bf16 (unmasked full-lane stores)
    acc = jnp.dot(x_ref[...], w_ref[...], preferred_element_type=jnp.float32)
    y = acc + shift_ref[...]
    o_ref[...] = jnp.maximum(y, 0.0).astype(o_ref.dtype)


def prepare_conv_bn_params(weight_oihw, gamma, beta, running_mean, running_var,
                           h, w, eps=1e-5):
    """Precompute the Toeplitz/BN-folded kernel operands.

    Call once per weight / BN-stat update and reuse across forward calls
    (this is the expensive wrapper prep the perf review asked to hoist)."""
    cout, cin, kh, kw = weight_oihw.shape
    assert kh % 2 == 1 and kw % 2 == 1, "'same' padding split assumes odd kernel"
    ph0, ph1 = (kh - 1) // 2, kh // 2
    pw0, pw1 = (kw - 1) // 2, kw // 2
    wp = w + pw0 + pw1

    # Fold BN (eval mode): scale goes into the weights, shift stays additive.
    scale = (gamma / jnp.sqrt(running_var + eps)).astype(jnp.float32)
    shift = (beta - running_mean * scale).astype(jnp.float32)

    # Toeplitz expansion along W:
    #   RHS[dh*Wp*Cin + j*Cin + ci, w*Cout + co] =
    #       weight[co, ci, dh, j-w] * scale[co]   if 0 <= j-w < kw else 0
    w_hwio = jnp.transpose(weight_oihw, (2, 3, 1, 0)).astype(jnp.float32)
    w_f = w_hwio * scale[None, None, None, :]                  # (kh, kw, Cin, Cout)
    jj = jnp.arange(wp)[:, None, None]
    ww = jnp.arange(w)[None, :, None]
    dd = jnp.arange(kw)[None, None, :]
    ind = (jj == ww + dd).astype(jnp.float32)                  # (Wp, W, kw)
    w_toep = jnp.einsum('jwd,hdio->hjiwo', ind, w_f)           # (kh, Wp, Cin, W, Cout)
    w_toep = w_toep.reshape(kh * wp * cin, w * cout).astype(jnp.bfloat16)

    shift_tiled = jnp.tile(shift, w).reshape(1, w * cout)      # (1, W*Cout), f32

    meta = ConvMeta(cin=cin, cout=cout, kh=kh, kw=kw, h=h, w=w,
                    ph0=ph0, ph1=ph1, pw0=pw0, pw1=pw1)
    return w_toep, shift_tiled, meta


def conv_block_forward_nhwc(x_nhwc, w_toep, shift_tiled, meta):
    """Fused Conv(3x3,'same',no bias) + BN(eval) + ReLU on an NHWC input."""
    n, h, w, cin = x_nhwc.shape
    assert (h, w, cin) == (meta.h, meta.w, meta.cin)
    kh = meta.kh
    hp = h + meta.ph0 + meta.ph1
    wp = w + meta.pw0 + meta.pw1
    cout = meta.cout

    # --- per-call activation prep (tiny; fuses into one small XLA prep op) ----
    x_pad = jnp.pad(x_nhwc.astype(jnp.float32),
                    ((0, 0), (meta.ph0, meta.ph1), (meta.pw0, meta.pw1), (0, 0)))
    slab = x_pad.reshape(n, hp, wp * cin)                      # (N, Hp, Wp*Cin)
    # H-axis im2col: row (n, h) gets the kh shifted padded rows concatenated.
    lhs = jnp.stack([slab[:, dh:dh + h, :] for dh in range(kh)], axis=2)
    lhs = lhs.reshape(n * h, kh * wp * cin).astype(jnp.bfloat16)   # (M, K)
    # ---------------------------------------------------------------------------

    m, k = lhs.shape
    ncols = w * cout

    cost = pl.CostEstimate(
        flops=2 * m * k * ncols,
        transcendentals=0,
        bytes_accessed=(lhs.size * 2 + w_toep.size * 2
                        + shift_tiled.size * 4 + m * ncols * 2))

    out = pl.pallas_call(
        _conv_bn_relu_kernel,
        out_shape=jax.ShapeDtypeStruct((m, ncols), jnp.bfloat16),
        grid=(1,),
        in_specs=[
            pl.BlockSpec((m, k), lambda i: (0, 0)),
            pl.BlockSpec((k, ncols), lambda i: (0, 0)),
            pl.BlockSpec((1, ncols), lambda i: (0, 0)),
        ],
        out_specs=pl.BlockSpec((m, ncols), lambda i: (0, 0)),
        cost_estimate=cost,
        compiler_params=pltpu.CompilerParams(
            dimension_semantics=("arbitrary",)),
    )(lhs, w_toep, shift_tiled)

    return out.reshape(n, h, w, cout)


def conv_block_forward(x_nchw, w_toep, shift_tiled, meta):
    # NCHW <-> NHWC boundary glue for the PyTorch layout; drops out entirely if
    # the surrounding model keeps NHWC end-to-end.
    x_nhwc = jnp.transpose(x_nchw, (0, 2, 3, 1))
    y_nhwc = conv_block_forward_nhwc(x_nhwc, w_toep, shift_tiled, meta)
    return jnp.transpose(y_nhwc, (0, 3, 1, 2))


if __name__ == "__main__":
    key = jax.random.PRNGKey(0)
    k_x, k_w, k_g, k_b, k_m, k_v = jax.random.split(key, 6)

    # Small shapes consistent with the module: batch=2, Cin=4, Cout=8, 16x16 spatial
    N, CIN, COUT, H, W = 2, 4, 8, 16, 16
    KH = KW = 3

    x = jax.random.normal(k_x, (N, CIN, H, W), dtype=jnp.float32)
    weight = jax.random.normal(k_w, (COUT, CIN, KH, KW), dtype=jnp.float32) * 0.1

    # Deterministic BN parameters (as-if checkpointed): gamma, beta, running stats
    gamma = 1.0 + 0.1 * jax.random.normal(k_g, (COUT,), dtype=jnp.float32)
    beta = 0.1 * jax.random.normal(k_b, (COUT,), dtype=jnp.float32)
    running_mean = 0.1 * jax.random.normal(k_m, (COUT,), dtype=jnp.float32)
    running_var = 1.0 + 0.1 * jax.random.uniform(k_v, (COUT,), dtype=jnp.float32)

    # Hoisted prep: computed once per weight update, reused every forward call.
    w_toep, shift_tiled, meta = prepare_conv_bn_params(
        weight, gamma, beta, running_mean, running_var, H, W)
    w_toep, shift_tiled = jax.block_until_ready((w_toep, shift_tiled))

    fwd = jax.jit(conv_block_forward, static_argnums=(3,))
    y = fwd(x, w_toep, shift_tiled, meta)
    y = jax.block_until_ready(y)

    # Sanity check against a pure-JAX f32 reference (loose tol: bf16 operands + bf16 out)
    ref_conv = jax.lax.conv_general_dilated(
        x, weight, window_strides=(1, 1), padding="SAME",
        dimension_numbers=("NCHW", "OIHW", "NCHW"))
    ref_scale = gamma / jnp.sqrt(running_var + 1e-5)
    ref_shift = beta - running_mean * ref_scale
    ref = jnp.maximum(ref_conv * ref_scale[None, :, None, None]
                      + ref_shift[None, :, None, None], 0.0)
    assert y.shape == (N, COUT, H, W)
    assert jnp.allclose(y.astype(jnp.float32), ref, atol=1e-1, rtol=1e-1)

    print("KERNEL_OK")
</pallas_src>

<mosaic_0001>
module attributes {stable_mosaic.version = 11 : i64} {
  func.func @_conv_bn_relu_kernel(%arg0: i32, %arg1: memref<32x216xbf16, #tpu.memory_space<vmem>>, %arg2: memref<216x128xbf16, #tpu.memory_space<vmem>>, %arg3: memref<1x128xf32, #tpu.memory_space<vmem>>, %arg4: memref<32x128xbf16, #tpu.memory_space<vmem>>) attributes {dimension_semantics = [#tpu.dimension_semantics<arbitrary>], iteration_bounds = array<i64: 1>, scalar_prefetch = 0 : i64, scratch_operands = 0 : i64, tpu.core_type = #tpu.core_type<tc>, window_params = [{pipeline_mode = #tpu.pipeline_mode<synchronous>, transform_indices = @transform_0, window_bounds = array<i64: 32, 216>}, {pipeline_mode = #tpu.pipeline_mode<synchronous>, transform_indices = @transform_1, window_bounds = array<i64: 216, 128>}, {pipeline_mode = #tpu.pipeline_mode<synchronous>, transform_indices = @transform_2, window_bounds = array<i64: 1, 128>}, {pipeline_mode = #tpu.pipeline_mode<synchronous>, transform_indices = @transform_3, window_bounds = array<i64: 32, 128>}]} {
    %c0 = arith.constant 0 : index
    %c0_0 = arith.constant 0 : index
    %0 = vector.load %arg1[%c0, %c0_0] : memref<32x216xbf16, #tpu.memory_space<vmem>>, vector<32x216xbf16>
    %c0_1 = arith.constant 0 : index
    %c0_2 = arith.constant 0 : index
    %1 = vector.load %arg2[%c0_1, %c0_2] : memref<216x128xbf16, #tpu.memory_space<vmem>>, vector<216x128xbf16>
    %cst = arith.constant dense<0.000000e+00> : vector<32x128xf32>
    %2 = tpu.matmul %0, %1, %cst {dimension_numbers = #tpu.dot_dimension_numbers<[1], [0], [0], [1], [0, 0, 1, 1], [], []>} : vector<32x216xbf16>, vector<216x128xbf16>, vector<32x128xf32> -> vector<32x128xf32>
    %c0_3 = arith.constant 0 : index
    %c0_4 = arith.constant 0 : index
    %3 = vector.load %arg3[%c0_3, %c0_4] : memref<1x128xf32, #tpu.memory_space<vmem>>, vector<1x128xf32>
    %4 = vector.broadcast %3 : vector<1x128xf32> to vector<32x128xf32>
    %5 = arith.addf %2, %4 : vector<32x128xf32>
    %cst_5 = arith.constant 0.000000e+00 : f32
    %6 = vector.broadcast %cst_5 : f32 to vector<32x128xf32>
    %7 = arith.maximumf %5, %6 : vector<32x128xf32>
    %8 = arith.truncf %7 : vector<32x128xf32> to vector<32x128xbf16>
    %c0_6 = arith.constant 0 : index
    %c0_7 = arith.constant 0 : index
    %9 = vector.load %arg4[%c0_6, %c0_7] : memref<32x128xbf16, #tpu.memory_space<vmem>>, vector<32x128xbf16>
    tpu.vector_store %arg4[%c0_6, %c0_7], %8 {strides = array<i32>} : memref<32x128xbf16, #tpu.memory_space<vmem>>, vector<32x128xbf16>,
    return
  }
  func.func @transform_0(%arg0: i32) -> (i32, i32) {
    %c0_i32 = arith.constant 0 : i32
    %c0_i32_0 = arith.constant 0 : i32
    %c0_i32_1 = arith.constant 0 : i32
    return %c0_i32, %c0_i32_0 : i32, i32
  }
  func.func @transform_1(%arg0: i32) -> (i32, i32) {
    %c0_i32 = arith.constant 0 : i32
    %c0_i32_0 = arith.constant 0 : i32
    %c0_i32_1 = arith.constant 0 : i32
    return %c0_i32, %c0_i32_0 : i32, i32
  }
  func.func @transform_2(%arg0: i32) -> (i32, i32) {
    %c0_i32 = arith.constant 0 : i32
    %c0_i32_0 = arith.constant 0 : i32
    %c0_i32_1 = arith.constant 0 : i32
    return %c0_i32, %c0_i32_0 : i32, i32
  }
  func.func @transform_3(%arg0: i32) -> (i32, i32) {
    %c0_i32 = arith.constant 0 : i32
    %c0_i32_0 = arith.constant 0 : i32
    %c0_i32_1 = arith.constant 0 : i32
    return %c0_i32, %c0_i32_0 : i32, i32
  }
}

</mosaic_0001>

<bundles_post_ra>
// kernel: conv_block_forward.1
= control target key start
LH: loop header
LB: loop body
LE: loop exit
PB: predicated region body
PF: predicated region fallthrough
CT: control target
= control target key end

     0   :  { %v329_v0 = vmov 0   ;;  %vm152_vm0 = vcmask 719872   ;;  %vm159_vm1 = vcmask 1043456   ;;  %s441_s1 = inlined_call_operand.vmem [shape: bf16[216,128], index: 1, kind: input, shape index: {}]   ;;  %s442_s0 = inlined_call_operand.vmem [shape: bf16[32,216], index: 0, kind: input, shape index: {}]   ;;  %s443_s2 = inlined_call_operand.vmem [shape: f32[1,128], index: 2, kind: input, shape index: {}]   ;;  %s444_s3 = inlined_call_operand.vmem [shape: bf16[32,128], index: 3, kind: output, shape index: {}]  }
   0x1   :  { %163 = vmatprep.subr.bf16.mxu0 %v329_v0  ;;  %280 = vmatprep.subr.bf16.mxu1 %v329_v0  ;;  %v309_v1 = vld [vmem:[%s441_s1] sm:$0xff]   ;;  %v310_v2 = vld [vmem:[%s441_s1 + $0x8] sm:$0xff]   ;;  %v311_v3 = vld [vmem:[%s441_s1 + $0x10] sm:$0xff]  }
   0x2   :  { %164 = vmatpush1.bf16.msra.mxu0 %v309_v1  ;;  %294 = vmatpush1.bf16.msra.mxu1 %v309_v1  ;;  %v312_v4 = vld [vmem:[%s441_s1 + $0x18] sm:$0xff]   ;;  %v313_v5 = vld [vmem:[%s441_s1 + $0x20] sm:$0xff]   ;;  %v314_v8 = vld [vmem:[%s441_s1 + $0x28] sm:$0xff]  }
   0x3   :  { %165 = vmatprep.subr.bf16.mxu0 %v329_v0  ;;  %281 = vmatprep.subr.bf16.mxu1 %v329_v0  ;;  %v325_v6 = vld [vmem:[%s442_s0 + $0x4] ss:$8 sps:$4 sm:$0xff]   ;;  %v328_v7 = vld [vmem:[%s442_s0 + $0x14] ss:$8 sps:$4 sm:$0xff]   ;;  %v322_v16 = vld [vmem:[%s441_s1 + $0x68] ss:$0 sps:$4 sm:$0xff]  }
   0x4   :  { %259 = vmatprep.mubr.msk.bf16.mxu0 %vm152_vm0, %v325_v6  ;;  %260 = vmatprep.mubr.msk.bf16.mxu1 %vm152_vm0, %v328_v7  ;;  %v315_v9 = vld [vmem:[%s441_s1 + $0x30] sm:$0xff]   ;;  %v316_v10 = vld [vmem:[%s441_s1 + $0x38] sm:$0xff]   ;;  %v317_v11 = vld [vmem:[%s441_s1 + $0x40] sm:$0xff]   ;;  %v161_v17 = vsel %vm159_vm1, %v322_v16, 0 }
   0x5   :  { %v318_v12 = vld [vmem:[%s441_s1 + $0x48] sm:$0xff]   ;;  %v319_v13 = vld [vmem:[%s441_s1 + $0x50] sm:$0xff]   ;;  %v320_v14 = vld [vmem:[%s441_s1 + $0x58] sm:$0xff]  }
   0x6   :  { %166 = vmatpush1.bf16.msra.mxu0 %v310_v2  ;;  %295 = vmatpush1.bf16.msra.mxu1 %v310_v2  ;;  %v321_v15 = vld [vmem:[%s441_s1 + $0x60] sm:$0xff]   ;;  %v326_v19 = vld [vmem:[%s442_s0 + $0x10] ss:$8 sps:$4 sm:$0xff]  }
   0x7   :  { %167 = vmatprep.subr.bf16.mxu0 %v329_v0  ;;  %282 = vmatprep.subr.bf16.mxu1 %v329_v0  ;;  %v323_v18 = vld [vmem:[%s442_s0] ss:$8 sps:$4 sm:$0xff]  }
   0x8   :  { %v240_v20 = vld [vmem:[%s443_s2] ss:$0 sm:$0xff] }
   0xa   :  { %168 = vmatpush1.bf16.msra.mxu0 %v311_v3  ;;  %296 = vmatpush1.bf16.msra.mxu1 %v311_v3 }
   0xb   :  { %169 = vmatprep.subr.bf16.mxu0 %v329_v0  ;;  %283 = vmatprep.subr.bf16.mxu1 %v329_v0 }
   0xe   :  { %170 = vmatpush1.bf16.msra.mxu0 %v312_v4  ;;  %297 = vmatpush1.bf16.msra.mxu1 %v312_v4 }
   0xf   :  { %171 = vmatprep.subr.bf16.mxu0 %v329_v0  ;;  %284 = vmatprep.subr.bf16.mxu1 %v329_v0 }
  0x12   :  { %172 = vmatpush1.bf16.msra.mxu0 %v313_v5  ;;  %298 = vmatpush1.bf16.msra.mxu1 %v313_v5 }
  0x13   :  { %173 = vmatprep.subr.bf16.mxu0 %v329_v0  ;;  %285 = vmatprep.subr.bf16.mxu1 %v329_v0 }
  0x16   :  { %174 = vmatpush1.bf16.msra.mxu0 %v314_v8  ;;  %299 = vmatpush1.bf16.msra.mxu1 %v314_v8 }
  0x17   :  { %175 = vmatprep.subr.bf16.mxu0 %v329_v0  ;;  %286 = vmatprep.subr.bf16.mxu1 %v329_v0 }
  0x1a   :  { %176 = vmatpush1.bf16.msra.mxu0 %v315_v9  ;;  %300 = vmatpush1.bf16.msra.mxu1 %v315_v9 }
  0x1b   :  { %177 = vmatprep.subr.bf16.mxu0 %v329_v0  ;;  %287 = vmatprep.subr.bf16.mxu1 %v329_v0 }
  0x1e   :  { %178 = vmatpush1.bf16.msra.mxu0 %v316_v10  ;;  %301 = vmatpush1.bf16.msra.mxu1 %v316_v10 }
  0x1f   :  { %179 = vmatprep.subr.bf16.mxu0 %v329_v0  ;;  %288 = vmatprep.subr.bf16.mxu1 %v329_v0 }
  0x22   :  { %180 = vmatpush1.bf16.msra.mxu0 %v317_v11  ;;  %302 = vmatpush1.bf16.msra.mxu1 %v317_v11 }
  0x23   :  { %181 = vmatprep.subr.bf16.mxu0 %v329_v0  ;;  %289 = vmatprep.subr.bf16.mxu1 %v329_v0 }
  0x26   :  { %182 = vmatpush1.bf16.msra.mxu0 %v318_v12  ;;  %303 = vmatpush1.bf16.msra.mxu1 %v318_v12 }
  0x27   :  { %183 = vmatprep.subr.bf16.mxu0 %v329_v0  ;;  %290 = vmatprep.subr.bf16.mxu1 %v329_v0 }
  0x2a   :  { %184 = vmatpush1.bf16.msra.mxu0 %v319_v13  ;;  %304 = vmatpush1.bf16.msra.mxu1 %v319_v13 }
  0x2b   :  { %185 = vmatprep.subr.bf16.mxu0 %v329_v0  ;;  %291 = vmatprep.subr.bf16.mxu1 %v329_v0 }
  0x2e   :  { %186 = vmatpush1.bf16.msra.mxu0 %v320_v14  ;;  %305 = vmatpush1.bf16.msra.mxu1 %v320_v14 }
  0x2f   :  { %187 = vmatprep.subr.bf16.mxu0 %v329_v0  ;;  %292 = vmatprep.subr.bf16.mxu1 %v329_v0 }
  0x32   :  { %188 = vmatpush1.bf16.msra.mxu0 %v321_v15  ;;  %306 = vmatpush1.bf16.msra.mxu1 %v321_v15 }
  0x33   :  { %189 = vmatprep.subr.bf16.mxu0 %v329_v0  ;;  %293 = vmatprep.subr.bf16.mxu1 %v329_v0 }
  0x36   :  { %190 = vmatpush1.bf16.msra.mxu0 %v161_v17  ;;  %307 = vmatpush1.bf16.msra.mxu1 %v161_v17 }
  0x39   :  { %196 = vmatmul.mubr.bf16.vlgmr.msra.gmra.mrb[0].mxu0 %v323_v18  ;;  %204 = vmatmul.mubr.bf16.vlgmr.msra.gmra.mrb[0].mxu1 %v326_v19 }
 0x10c   :  { %v197_v21 = vpop.f32.mrb[0].mxu0  ;;  %v205_v22 = vpop.f32.mrb[0].mxu1 }
 0x10d   :  { %v198_v23 = vadd.f32 %v240_v20, %v197_v21  ;;  %v206_v24 = vadd.f32 %v240_v20, %v205_v22  ;;  %v199_v25 = vpop.f32.mrb[1].mxu0  ;;  %v207_v26 = vpop.f32.mrb[1].mxu1 }
 0x10e   :  { %v200_v27 = vpop.f32.mrb[2].mxu0  ;;  %v208_v28 = vpop.f32.mrb[2].mxu1 }
 0x10f   :  { %v201_v29 = vadd.f32 %v240_v20, %v200_v27  ;;  %v209_v30 = vadd.f32 %v240_v20, %v208_v28  ;;  %v202_v31 = vpop.f32.mrb[3].mxu0  ;;  %v210_v32 = vpop.f32.mrb[3].mxu1  ;;  %v212_v33 = vmax.f32 %v198_v23, 0.0  ;;  %v214_v34 = vmax.f32 %v206_v24, 0.0 }
 0x111   :  { %v213_v35 = vmax.f32 %v201_v29, 0.0  ;;  %v215_v36 = vmax.f32 %v209_v30, 0.0 }
 0x113   :  { %v272_v37 = vpack.c.bf16 %v213_v35, %v212_v33  ;;  %v277_v38 = vpack.c.bf16 %v215_v36, %v214_v34 }
 0x115   :  { %273 = vst [vmem:[%s444_s3] sm:$0xff] %v272_v37   ;;  %279 = vst [vmem:[%s444_s3 + $0x8] sm:$0xff] %v277_v38  }

</bundles_post_ra>
